<compile_context>
chip_gen: v5e
topology: v5e:2x2
jax: 0.10.0
libtpu: 0.0.40
codegen_flags: <defaults>
</compile_context>

<pallas_src>
import jax
import jax.numpy as jnp
from jax.experimental import pallas as pl
from jax.experimental.pallas import tpu as pltpu


def _convt_matmul_kernel(cols_ref, w_ref, b_ref, out_ref):
    # cols_ref: (CKp, Pblk)  w_ref: (Rp, CKp)  b_ref: (Rp, 1)  out_ref: (Rp, Pblk)
    acc = jnp.dot(w_ref[...], cols_ref[...],
                  preferred_element_type=jnp.float32)          # MXU
    out_ref[...] = (acc + b_ref[...]).astype(out_ref.dtype)


def _num_lane_blocks():
    """2-way lane split on v7x (2 TensorCores/chip); single block on v5e/v6e."""
    try:
        kind = jax.devices()[0].device_kind.lower()
        if "v7" in kind:
            return 2
    except Exception:
        pass
    return 1


def conv_transpose2d_pallas(x, weight, bias, *, stride=2, padding=1,
                            lane_blocks=None):
    """PyTorch ConvTranspose2d forward.
    x: (N, C_in, H, W) NCHW; weight: (C_in, C_out, K, K); bias: (C_out,).
    Specialized to the module config stride=2, padding=1, K=3."""
    N, C_in, H, W = x.shape
    _, C_out, K, _ = weight.shape
    s, p = stride, padding
    assert s == 2 and p == 1 and K == 3, \
        "kernel specialized to stride=2, padding=1, kernel_size=3"
    pp = K - 1 - p                       # padding of the equivalent direct conv (=1)
    Ho = (H - 1) * s - 2 * p + K         # = 2H - 1
    Wo = (W - 1) * s - 2 * p + K         # = 2W - 1

    # ---- glue: shifted input stack (s*s taps), shared by all output phases ----
    xp = jnp.pad(x, ((0, 0), (0, 0), (0, 1), (0, 1)))   # one zero row/col at the end
    shifted = jnp.stack(
        [xp[:, :, dh:dh + H, dw:dw + W] for dh in range(s) for dw in range(s)],
        axis=0)                                          # (s*s, N, C_in, H, W)
    P = N * H * W
    CK = s * s * C_in
    cols = jnp.transpose(shifted, (0, 2, 1, 3, 4)).reshape(CK, P)

    # ---- glue: per-phase weight matrix (s*s*C_out, s*s*C_in) ----
    # Output phase (r, c) covers out[:, :, s*a + r, s*b + c].  Shifted input tap
    # (dh, dw) (i.e. x[a+dh, b+dw]) contributes through flipped-kernel index
    # kh = s*dh + pp - r (if 0 <= kh < K), and likewise kw.
    w_flip = jnp.flip(weight, axis=(2, 3))               # (C_in, C_out, K, K)
    R = s * s * C_out
    w_all = jnp.zeros((R, CK), dtype=x.dtype)
    for r in range(s):
        for c in range(s):
            q = r * s + c
            for dh in range(s):
                kh = s * dh + pp - r
                if not (0 <= kh < K):
                    continue
                for dw in range(s):
                    kw = s * dw + pp - c
                    if not (0 <= kw < K):
                        continue
                    t = dh * s + dw
                    blk = w_flip[:, :, kh, kw].T          # (C_out, C_in)
                    w_all = w_all.at[q * C_out:(q + 1) * C_out,
                                     t * C_in:(t + 1) * C_in].set(blk)
    b_all = jnp.tile(bias, s * s).reshape(R, 1).astype(x.dtype)

    # ---- alignment padding: sublane (8) on rows/contraction, lane (128) on P ----
    if lane_blocks is None:
        lane_blocks = _num_lane_blocks()
    Rp = ((R + 7) // 8) * 8
    CKp = ((CK + 7) // 8) * 8
    lane_quant = 128 * lane_blocks
    Pp = ((P + lane_quant - 1) // lane_quant) * lane_quant
    cols = jnp.pad(cols, ((0, CKp - CK), (0, Pp - P)))
    w_all = jnp.pad(w_all, ((0, Rp - R), (0, CKp - CK)))
    b_all = jnp.pad(b_all, ((0, Rp - R), (0, 0)))
    Pblk = Pp // lane_blocks

    # ---- hot path: one fat matmul (+bias), lane-split only for megacore ----
    out_all = pl.pallas_call(
        _convt_matmul_kernel,
        out_shape=jax.ShapeDtypeStruct((Rp, Pp), x.dtype),
        grid_spec=pltpu.PrefetchScalarGridSpec(
            num_scalar_prefetch=0,
            grid=(lane_blocks,),
            in_specs=[
                pl.BlockSpec((CKp, Pblk), lambda i: (0, i)),
                pl.BlockSpec((Rp, CKp), lambda i: (0, 0)),
                pl.BlockSpec((Rp, 1), lambda i: (0, 0)),
            ],
            out_specs=pl.BlockSpec((Rp, Pblk), lambda i: (0, i)),
        ),
        compiler_params=pltpu.CompilerParams(
            dimension_semantics=("parallel",)),
    )(cols, w_all, b_all)

    # ---- glue: drop padding, interleave the s*s phases into (N, C_out, Ho, Wo) ----
    out_ph = out_all[:R, :P].reshape(s, s, C_out, N, H, W)   # (r, c, o, n, a, b)
    inter = jnp.transpose(out_ph, (3, 2, 4, 0, 5, 1)).reshape(N, C_out, s * H, s * W)
    return inter[:, :, :Ho, :Wo]


def conv_transpose2d_ref(x, weight, bias, *, stride=2, padding=1):
    """Direct scatter implementation of PyTorch ConvTranspose2d semantics."""
    N, C_in, H, W = x.shape
    _, C_out, K, _ = weight.shape
    s, p = stride, padding
    y = jnp.einsum('nchw,cokl->nohwkl', x, weight)           # (N, Cout, H, W, K, K)
    full = jnp.zeros((N, C_out, (H - 1) * s + K, (W - 1) * s + K), dtype=x.dtype)
    for kh in range(K):
        for kw in range(K):
            full = full.at[:, :, kh:kh + (H - 1) * s + 1:s,
                                 kw:kw + (W - 1) * s + 1:s].add(y[..., kh, kw])
    out = full[:, :, p:full.shape[2] - p, p:full.shape[3] - p]
    return out + bias[None, :, None, None]


if __name__ == "__main__":
    key = jax.random.PRNGKey(0)
    k_x, k_w, k_b = jax.random.split(key, 3)

    N, C_in, C_out, K, H, W = 2, 10, 16, 3, 16, 16
    x = jax.random.normal(k_x, (N, C_in, H, W), dtype=jnp.float32)
    # PyTorch ConvTranspose2d weight shape: (in_channels, out_channels, kH, kW)
    weight = jax.random.normal(k_w, (C_in, C_out, K, K), dtype=jnp.float32) * 0.1
    bias = jax.random.normal(k_b, (C_out,), dtype=jnp.float32) * 0.1

    out = conv_transpose2d_pallas(x, weight, bias, stride=2, padding=1)
    out = jax.block_until_ready(out)

    ref = conv_transpose2d_ref(x, weight, bias, stride=2, padding=1)
    assert out.shape == (N, C_out, 2 * H - 1, 2 * W - 1), out.shape
    assert jnp.allclose(out, ref, atol=1e-4, rtol=1e-4), \
        float(jnp.max(jnp.abs(out - ref)))

    print("KERNEL_OK")
</pallas_src>

<mosaic_0001>
module attributes {stable_mosaic.version = 11 : i64} {
  func.func @_convt_matmul_kernel(%arg0: i32, %arg1: memref<40x512xf32, #tpu.memory_space<vmem>>, %arg2: memref<64x40xf32, #tpu.memory_space<vmem>>, %arg3: memref<64x1xf32, #tpu.memory_space<vmem>>, %arg4: memref<64x512xf32, #tpu.memory_space<vmem>>) attributes {dimension_semantics = [#tpu.dimension_semantics<parallel>], iteration_bounds = array<i64: 1>, scalar_prefetch = 0 : i64, scratch_operands = 0 : i64, tpu.core_type = #tpu.core_type<tc>, window_params = [{transform_indices = @transform_0, window_bounds = array<i64: 40, 512>}, {pipeline_mode = #tpu.pipeline_mode<synchronous>, transform_indices = @transform_1, window_bounds = array<i64: 64, 40>}, {pipeline_mode = #tpu.pipeline_mode<synchronous>, transform_indices = @transform_2, window_bounds = array<i64: 64, 1>}, {transform_indices = @transform_3, window_bounds = array<i64: 64, 512>}]} {
    %c0 = arith.constant 0 : index
    %c0_0 = arith.constant 0 : index
    %0 = vector.load %arg2[%c0, %c0_0] : memref<64x40xf32, #tpu.memory_space<vmem>>, vector<64x40xf32>
    %c0_1 = arith.constant 0 : index
    %c0_2 = arith.constant 0 : index
    %1 = vector.load %arg1[%c0_1, %c0_2] : memref<40x512xf32, #tpu.memory_space<vmem>>, vector<40x512xf32>
    %cst = arith.constant dense<0.000000e+00> : vector<64x512xf32>
    %2 = tpu.matmul %0, %1, %cst {dimension_numbers = #tpu.dot_dimension_numbers<[1], [0], [0], [1], [0, 0, 1, 1], [], []>} : vector<64x40xf32>, vector<40x512xf32>, vector<64x512xf32> -> vector<64x512xf32>
    %c0_3 = arith.constant 0 : index
    %c0_4 = arith.constant 0 : index
    %3 = vector.load %arg3[%c0_3, %c0_4] : memref<64x1xf32, #tpu.memory_space<vmem>>, vector<64x1xf32>
    %4 = vector.broadcast %3 : vector<64x1xf32> to vector<64x512xf32>
    %5 = arith.addf %2, %4 : vector<64x512xf32>
    %c0_5 = arith.constant 0 : index
    %c0_6 = arith.constant 0 : index
    %6 = vector.load %arg4[%c0_5, %c0_6] : memref<64x512xf32, #tpu.memory_space<vmem>>, vector<64x512xf32>
    tpu.vector_store %arg4[%c0_5, %c0_6], %5 {strides = array<i32>} : memref<64x512xf32, #tpu.memory_space<vmem>>, vector<64x512xf32>,
    return
  }
  func.func @transform_0(%arg0: i32) -> (i32, i32) {
    %c0_i32 = arith.constant 0 : i32
    %c0_i32_0 = arith.constant 0 : i32
    return %c0_i32, %arg0 : i32, i32
  }
  func.func @transform_1(%arg0: i32) -> (i32, i32) {
    %c0_i32 = arith.constant 0 : i32
    %c0_i32_0 = arith.constant 0 : i32
    %c0_i32_1 = arith.constant 0 : i32
    return %c0_i32, %c0_i32_0 : i32, i32
  }
  func.func @transform_2(%arg0: i32) -> (i32, i32) {
    %c0_i32 = arith.constant 0 : i32
    %c0_i32_0 = arith.constant 0 : i32
    %c0_i32_1 = arith.constant 0 : i32
    return %c0_i32, %c0_i32_0 : i32, i32
  }
  func.func @transform_3(%arg0: i32) -> (i32, i32) {
    %c0_i32 = arith.constant 0 : i32
    %c0_i32_0 = arith.constant 0 : i32
    return %c0_i32, %arg0 : i32, i32
  }
}

</mosaic_0001>

<bundles_post_ra>
// kernel: tpu_custom_call.1
= control target key start
LH: loop header
LB: loop body
LE: loop exit
PB: predicated region body
PF: predicated region fallthrough
CT: control target
= control target key end

     0   :  { %vm91_vm0 = vcmask 326656   ;;  %s562_s0 = inlined_call_operand.vmem [shape: f32[40,512], index: 0, kind: input, shape index: {}]   ;;  %s563_s1 = inlined_call_operand.vmem [shape: f32[64,40], index: 1, kind: input, shape index: {}]   ;;  %s564_s2 = inlined_call_operand.vmem [shape: f32[64,1], index: 2, kind: input, shape index: {}]   ;;  %s565_s3 = inlined_call_operand.hbm [shape: f32[64,512], index: 3, kind: output, shape index: {}]  }
   0x1   :  { %v39_v0 = vld [vmem:[%s562_s0 + $0x80] sm:$0xff]  ;;  %v40_v1 = vld [vmem:[%s562_s0 + $0x88] sm:$0xff]  ;;  %v41_v2 = vld [vmem:[%s562_s0 + $0x90] sm:$0xff] }
   0x2   :  { %127 = vmatpush.msra.mxu0 %v39_v0  ;;  %168 = vmatpush.msra.mxu1 %v40_v1  ;;  %v42_v3 = vld [vmem:[%s562_s0 + $0x98] sm:$0xff]  ;;  %v35_v4 = vld [vmem:[%s562_s0 + $0x60] sm:$0xff]  ;;  %v36_v5 = vld [vmem:[%s562_s0 + $0x68] sm:$0xff] }
   0x3   :  { %209 = vmatpush.msra.mxu2 %v41_v2  ;;  %250 = vmatpush.msra.mxu3 %v42_v3  ;;  %v37_v6 = vld [vmem:[%s562_s0 + $0x70] sm:$0xff]  ;;  %v38_v7 = vld [vmem:[%s562_s0 + $0x78] sm:$0xff]  ;;  %v31_v8 = vld [vmem:[%s562_s0 + $0x40] sm:$0xff] }
   0x4   :  { %128 = vmatpush.msra.mxu0 %v35_v4  ;;  %169 = vmatpush.msra.mxu1 %v36_v5  ;;  %v32_v9 = vld [vmem:[%s562_s0 + $0x48] sm:$0xff]  ;;  %v33_v10 = vld [vmem:[%s562_s0 + $0x50] sm:$0xff]  ;;  %v34_v11 = vld [vmem:[%s562_s0 + $0x58] sm:$0xff] }
   0x5   :  { %210 = vmatpush.msra.mxu2 %v37_v6  ;;  %251 = vmatpush.msra.mxu3 %v38_v7  ;;  %v27_v12 = vld [vmem:[%s562_s0 + $0x20] sm:$0xff]  ;;  %v28_v13 = vld [vmem:[%s562_s0 + $0x28] sm:$0xff]  ;;  %v29_v14 = vld [vmem:[%s562_s0 + $0x30] sm:$0xff] }
   0x6   :  { %129 = vmatpush.msra.mxu0 %v31_v8  ;;  %170 = vmatpush.msra.mxu1 %v32_v9  ;;  %v30_v15 = vld [vmem:[%s562_s0 + $0x38] sm:$0xff]  ;;  %v23_v16 = vld [vmem:[%s562_s0] sm:$0xff]  ;;  %v24_v17 = vld [vmem:[%s562_s0 + $0x8] sm:$0xff] }
   0x7   :  { %211 = vmatpush.msra.mxu2 %v33_v10  ;;  %252 = vmatpush.msra.mxu3 %v34_v11  ;;  %v25_v18 = vld [vmem:[%s562_s0 + $0x10] sm:$0xff]  ;;  %v26_v19 = vld [vmem:[%s562_s0 + $0x18] sm:$0xff]  ;;  %v15_v20 = vld [vmem:[%s563_s1] sm:$0xff] }
   0x8   :  { %130 = vmatpush.msra.mxu0 %v27_v12  ;;  %171 = vmatpush.msra.mxu1 %v28_v13 }
   0x9   :  { %212 = vmatpush.msra.mxu2 %v29_v14  ;;  %253 = vmatpush.msra.mxu3 %v30_v15 }
   0xa   :  { %131 = vmatpush.msra.mxu0 %v23_v16  ;;  %172 = vmatpush.msra.mxu1 %v24_v17 }
   0xb   :  { %8 = vsyncpa [#allocation3], 0  ;;  %213 = vmatpush.msra.mxu2 %v25_v18  ;;  %254 = vmatpush.msra.mxu3 %v26_v19  ;;  %v43_v21 = vld [vmem:[%s564_s2] sm:$0xff]  ;;  %v45_v22 = vld [vmem:[%s564_s2 + $0x10] sm:$0xff]  ;;  %v395_v23 = vmov 0   ;;  %s318_s30 = sshll.u32 %s565_s3, 4  ;;  %s319_s30 = int_to_ptr.hbm [resolvable:$true] %s318_s30 }
   0xc   :  { %330 = vmatmul.msk.f32.vlgmr.msra.gmra.mxu0 %vm91_vm0, %v15_v20  ;;  %338 = vmatmul.msk.f32.vlgmr.msra.gmra.mxu1 %vm91_vm0, %v15_v20  ;;  %v16_v24 = vld [vmem:[%s563_s1 + $0x8] sm:$0xff]  ;;  %v46_v26 = vld [vmem:[%s564_s2 + $0x18] sm:$0xff]  ;;  %v17_v27 = vld [vmem:[%s563_s1 + $0x10] sm:$0xff]  ;;  %s397_s4 = smov 512   ;;  %s398_s5 = smov 32  }
   0xd   :  { %346 = vmatmul.msk.f32.vlgmr.msra.gmra.mxu2 %vm91_vm0, %v15_v20  ;;  %354 = vmatmul.msk.f32.vlgmr.msra.gmra.mxu3 %vm91_vm0, %v15_v20  ;;  %v44_v25 = vld [vmem:[%s564_s2 + $0x8] sm:$0xff]  ;;  %v18_v28 = vld [vmem:[%s563_s1 + $0x18] sm:$0xff]  ;;  %v49_v30 = vld [vmem:[%s564_s2 + $0x30] sm:$0xff] }
   0xe   :  { %366 = vset.pattern.permute.xlu0 %v395_v23  ;;  %367 = vset.pattern.permute.xlu1 %v395_v23  ;;  %v50_v29 = vld [vmem:[%s564_s2 + $0x38] sm:$0xff]  ;;  %v47_v31 = vld [vmem:[%s564_s2 + $0x20] sm:$0xff]  ;;  %v48_v33 = vld [vmem:[%s564_s2 + $0x28] sm:$0xff] }
   0xf   :  { %53 = vperm.xlu0 %366, %v43_v21   ;;  %63 = vperm.xlu1 %367, %v45_v22   ;;  %v19_v32 = vld [vmem:[%s563_s1 + $0x20] sm:$0xff]  ;;  %v20_v34 = vld [vmem:[%s563_s1 + $0x28] sm:$0xff]  ;;  %v21_v35 = vld [vmem:[%s563_s1 + $0x30] sm:$0xff] }
  0x10   :  { %368 = vset.pattern.permute.xlu2 %v395_v23  ;;  %v22_v36 = vld [vmem:[%s563_s1 + $0x38] sm:$0xff]  ;;  %s396_s1 = smov [#allocation2]  }
  0x11   :  { %73 = vperm.xlu2 %368, %v47_v31   ;;  %s316_s28 = sshll.u32 %s396_s1, 4  ;;  %s317_s28 = int_to_ptr.vmem [resolvable:$true] %s316_s28 }
  0x14   :  { %331 = vmatmul.msk.f32.gmra.mxu0 %vm91_vm0, %v16_v24  ;;  %339 = vmatmul.msk.f32.gmra.mxu1 %vm91_vm0, %v16_v24 }
  0x15   :  { %347 = vmatmul.msk.f32.gmra.mxu2 %vm91_vm0, %v16_v24  ;;  %355 = vmatmul.msk.f32.gmra.mxu3 %vm91_vm0, %v16_v24 }
  0x17   :  { %58 = vperm.xlu0 %366, %v44_v25   ;;  %68 = vperm.xlu1 %367, %v46_v26  }
  0x19   :  { %78 = vperm.xlu2 %368, %v48_v33  }
  0x1c   :  { %332 = vmatmul.msk.f32.gmra.mxu0 %vm91_vm0, %v17_v27  ;;  %340 = vmatmul.msk.f32.gmra.mxu1 %vm91_vm0, %v17_v27 }
  0x1d   :  { %348 = vmatmul.msk.f32.gmra.mxu2 %vm91_vm0, %v17_v27  ;;  %356 = vmatmul.msk.f32.gmra.mxu3 %vm91_vm0, %v17_v27 }
  0x1f   :  { %88 = vperm.xlu1 %367, %v50_v29   ;;  %83 = vperm.xlu0 %366, %v49_v30  }
  0x24   :  { %333 = vmatmul.msk.f32.gmra.mxu0 %vm91_vm0, %v18_v28  ;;  %341 = vmatmul.msk.f32.gmra.mxu1 %vm91_vm0, %v18_v28 }
  0x25   :  { %349 = vmatmul.msk.f32.gmra.mxu2 %vm91_vm0, %v18_v28  ;;  %357 = vmatmul.msk.f32.gmra.mxu3 %vm91_vm0, %v18_v28 }
  0x2c   :  { %334 = vmatmul.msk.f32.gmra.mxu0 %vm91_vm0, %v19_v32  ;;  %342 = vmatmul.msk.f32.gmra.mxu1 %vm91_vm0, %v19_v32 }
  0x2d   :  { %350 = vmatmul.msk.f32.gmra.mxu2 %vm91_vm0, %v19_v32  ;;  %358 = vmatmul.msk.f32.gmra.mxu3 %vm91_vm0, %v19_v32 }
  0x34   :  { %335 = vmatmul.msk.f32.gmra.mxu0 %vm91_vm0, %v20_v34  ;;  %343 = vmatmul.msk.f32.gmra.mxu1 %vm91_vm0, %v20_v34 }
  0x35   :  { %351 = vmatmul.msk.f32.gmra.mxu2 %vm91_vm0, %v20_v34  ;;  %359 = vmatmul.msk.f32.gmra.mxu3 %vm91_vm0, %v20_v34 }
  0x3c   :  { %336 = vmatmul.msk.f32.gmra.mxu0 %vm91_vm0, %v21_v35  ;;  %344 = vmatmul.msk.f32.gmra.mxu1 %vm91_vm0, %v21_v35 }
  0x3d   :  { %352 = vmatmul.msk.f32.gmra.mxu2 %vm91_vm0, %v21_v35  ;;  %360 = vmatmul.msk.f32.gmra.mxu3 %vm91_vm0, %v21_v35 }
  0x44   :  { %337 = vmatmul.msk.f32.gmra.mxu0 %vm91_vm0, %v22_v36  ;;  %345 = vmatmul.msk.f32.gmra.mxu1 %vm91_vm0, %v22_v36 }
  0x45   :  { %353 = vmatmul.msk.f32.gmra.mxu2 %vm91_vm0, %v22_v36  ;;  %361 = vmatmul.msk.f32.gmra.mxu3 %vm91_vm0, %v22_v36 }
  0x6b   :  { %v74_v5 = vpop.permute.xlu2 %73 }
  0x73   :  { %v79_v14 = vpop.permute.xlu2 %78 }
  0x81   :  { %v54_v37 = vpop.permute.xlu0 %53  ;;  %v64_v51 = vpop.permute.xlu1 %63 }
  0x89   :  { %v133_v38 = vpop.f32.mrf.mxu0  ;;  %v174_v39 = vpop.f32.mrf.mxu1 }
  0x8a   :  { %v134_v40 = vadd.f32 %v133_v38, %v54_v37  ;;  %v175_v41 = vadd.f32 %v174_v39, %v54_v37  ;;  %v59_v42 = vpop.permute.xlu0 %58  ;;  %v69_v60 = vpop.permute.xlu1 %68 }
  0x8c   :  { %280 = vst [vmem:[#allocation2] sm:$0xff] %v134_v40 }
  0x8d   :  { %281 = vst [vmem:[#allocation2 + $0x8] sm:$0xff] %v175_v41 }
  0x90   :  { %v215_v43 = vpop.f32.mrf.mxu2  ;;  %v256_v44 = vpop.f32.mrf.mxu3 }
  0x91   :  { %v216_v45 = vadd.f32 %v215_v43, %v54_v37  ;;  %v257_v46 = vadd.f32 %v256_v44, %v54_v37  ;;  %v136_v47 = vpop.f32.mrf.mxu0  ;;  %v177_v48 = vpop.f32.mrf.mxu1 }
  0x92   :  { %v137_v49 = vadd.f32 %v136_v47, %v59_v42  ;;  %v178_v50 = vadd.f32 %v177_v48, %v59_v42  ;;  %v84_v23 = vpop.permute.xlu0 %83  ;;  %v89_v32 = vpop.permute.xlu1 %88 }
  0x93   :  { %282 = vst [vmem:[#allocation2 + $0x10] sm:$0xff] %v216_v45 }
  0x94   :  { %283 = vst [vmem:[#allocation2 + $0x18] sm:$0xff] %v257_v46 }
  0x95   :  { %284 = vst [vmem:[#allocation2 + $0x20] sm:$0xff] %v137_v49 }
  0x96   :  { %285 = vst [vmem:[#allocation2 + $0x28] sm:$0xff] %v178_v50 }
  0x98   :  { %v218_v52 = vpop.f32.mrf.mxu2  ;;  %v259_v53 = vpop.f32.mrf.mxu3 }
  0x99   :  { %v219_v54 = vadd.f32 %v218_v52, %v59_v42  ;;  %v260_v55 = vadd.f32 %v259_v53, %v59_v42  ;;  %v139_v56 = vpop.f32.mrf.mxu0  ;;  %v180_v57 = vpop.f32.mrf.mxu1 }
  0x9a   :  { %v140_v58 = vadd.f32 %v139_v56, %v64_v51  ;;  %v181_v59 = vadd.f32 %v180_v57, %v64_v51 }
  0x9b   :  { %286 = vst [vmem:[#allocation2 + $0x30] sm:$0xff] %v219_v54 }
  0x9c   :  { %287 = vst [vmem:[#allocation2 + $0x38] sm:$0xff] %v260_v55 }
  0x9d   :  { %288 = vst [vmem:[#allocation2 + $0x40] sm:$0xff] %v140_v58 }
  0x9e   :  { %289 = vst [vmem:[#allocation2 + $0x48] sm:$0xff] %v181_v59 }
  0xa0   :  { %v221_v61 = vpop.f32.mrf.mxu2  ;;  %v262_v62 = vpop.f32.mrf.mxu3 }
  0xa1   :  { %v222_v63 = vadd.f32 %v221_v61, %v64_v51  ;;  %v263_v0 = vadd.f32 %v262_v62, %v64_v51  ;;  %v142_v1 = vpop.f32.mrf.mxu0  ;;  %v183_v2 = vpop.f32.mrf.mxu1 }
  0xa2   :  { %v143_v3 = vadd.f32 %v142_v1, %v69_v60  ;;  %v184_v4 = vadd.f32 %v183_v2, %v69_v60 }
  0xa3   :  { %290 = vst [vmem:[#allocation2 + $0x50] sm:$0xff] %v222_v63 }
  0xa4   :  { %291 = vst [vmem:[#allocation2 + $0x58] sm:$0xff] %v263_v0 }
  0xa5   :  { %292 = vst [vmem:[#allocation2 + $0x60] sm:$0xff] %v143_v3 }
  0xa6   :  { %293 = vst [vmem:[#allocation2 + $0x68] sm:$0xff] %v184_v4 }
  0xa8   :  { %v224_v6 = vpop.f32.mrf.mxu2  ;;  %v265_v7 = vpop.f32.mrf.mxu3 }
  0xa9   :  { %v225_v8 = vadd.f32 %v224_v6, %v69_v60  ;;  %v266_v9 = vadd.f32 %v265_v7, %v69_v60  ;;  %v145_v10 = vpop.f32.mrf.mxu0  ;;  %v186_v11 = vpop.f32.mrf.mxu1 }
  0xaa   :  { %v146_v12 = vadd.f32 %v145_v10, %v74_v5  ;;  %v187_v13 = vadd.f32 %v186_v11, %v74_v5 }
  0xab   :  { %294 = vst [vmem:[#allocation2 + $0x70] sm:$0xff] %v225_v8 }
  0xac   :  { %295 = vst [vmem:[#allocation2 + $0x78] sm:$0xff] %v266_v9 }
  0xad   :  { %296 = vst [vmem:[#allocation2 + $0x80] sm:$0xff] %v146_v12 }
  0xae   :  { %297 = vst [vmem:[#allocation2 + $0x88] sm:$0xff] %v187_v13 }
  0xb0   :  { %v227_v15 = vpop.f32.mrf.mxu2  ;;  %v268_v16 = vpop.f32.mrf.mxu3 }
  0xb1   :  { %v228_v17 = vadd.f32 %v227_v15, %v74_v5  ;;  %v269_v18 = vadd.f32 %v268_v16, %v74_v5  ;;  %v148_v19 = vpop.f32.mrf.mxu0  ;;  %v189_v20 = vpop.f32.mrf.mxu1 }
  0xb2   :  { %v149_v21 = vadd.f32 %v148_v19, %v79_v14  ;;  %v190_v22 = vadd.f32 %v189_v20, %v79_v14 }
  0xb3   :  { %298 = vst [vmem:[#allocation2 + $0x90] sm:$0xff] %v228_v17 }
  0xb4   :  { %299 = vst [vmem:[#allocation2 + $0x98] sm:$0xff] %v269_v18 }
  0xb5   :  { %300 = vst [vmem:[#allocation2 + $0xa0] sm:$0xff] %v149_v21 }
  0xb6   :  { %301 = vst [vmem:[#allocation2 + $0xa8] sm:$0xff] %v190_v22 }
  0xb8   :  { %v230_v24 = vpop.f32.mrf.mxu2  ;;  %v271_v25 = vpop.f32.mrf.mxu3 }
  0xb9   :  { %v231_v26 = vadd.f32 %v230_v24, %v79_v14  ;;  %v272_v27 = vadd.f32 %v271_v25, %v79_v14  ;;  %v151_v28 = vpop.f32.mrf.mxu0  ;;  %v192_v29 = vpop.f32.mrf.mxu1 }
  0xba   :  { %v152_v30 = vadd.f32 %v151_v28, %v84_v23  ;;  %v193_v31 = vadd.f32 %v192_v29, %v84_v23 }
  0xbb   :  { %302 = vst [vmem:[#allocation2 + $0xb0] sm:$0xff] %v231_v26 }
  0xbc   :  { %303 = vst [vmem:[#allocation2 + $0xb8] sm:$0xff] %v272_v27 }
  0xbd   :  { %304 = vst [vmem:[#allocation2 + $0xc0] sm:$0xff] %v152_v30 }
  0xbe   :  { %305 = vst [vmem:[#allocation2 + $0xc8] sm:$0xff] %v193_v31 }
  0xc0   :  { %v233_v33 = vpop.f32.mrf.mxu2  ;;  %v274_v34 = vpop.f32.mrf.mxu3 }
  0xc1   :  { %v234_v35 = vadd.f32 %v233_v33, %v84_v23  ;;  %v275_v36 = vadd.f32 %v274_v34, %v84_v23  ;;  %v154_v37 = vpop.f32.mrf.mxu0  ;;  %v195_v38 = vpop.f32.mrf.mxu1 }
  0xc2   :  { %v155_v39 = vadd.f32 %v154_v37, %v89_v32  ;;  %v196_v40 = vadd.f32 %v195_v38, %v89_v32 }
  0xc3   :  { %306 = vst [vmem:[#allocation2 + $0xd0] sm:$0xff] %v234_v35 }
  0xc4   :  { %307 = vst [vmem:[#allocation2 + $0xd8] sm:$0xff] %v275_v36 }
  0xc5   :  { %308 = vst [vmem:[#allocation2 + $0xe0] sm:$0xff] %v155_v39 }
  0xc6   :  { %309 = vst [vmem:[#allocation2 + $0xe8] sm:$0xff] %v196_v40 }
  0xc8   :  { %v236_v41 = vpop.f32.mrf.mxu2  ;;  %v277_v42 = vpop.f32.mrf.mxu3 }
  0xc9   :  { %v237_v43 = vadd.f32 %v236_v41, %v89_v32  ;;  %v278_v44 = vadd.f32 %v277_v42, %v89_v32 }
  0xcb   :  { %310 = vst [vmem:[#allocation2 + $0xf0] sm:$0xff] %v237_v43 }
  0xcc   :  { %311 = vst [vmem:[#allocation2 + $0xf8] sm:$0xff] %v278_v44 }
  0xcd   :  { %324 = dma.vmem_to_hbm [thread:$0]  %s317_s28, 4096, %s319_s30, [#allocation3], %s397_s4, %s397_s4, %s398_s5  }
  0xce   :  { %393 = dma.done.wait [#allocation3], 4096  }
  0xcf   :  { %394 = vsyncadd [#allocation3], 4294963200 }
  0xd0   :  { %329 = vsyncpa [#allocation3], 1 }

</bundles_post_ra>
